<compile_context>
chip_gen: v7x
topology: tpu7x:2x2x1
jax: 0.10.0
libtpu: 0.0.40
codegen_flags: <defaults>
</compile_context>

<pallas_src>
import functools

import jax
import jax.numpy as jnp
from jax.experimental import pallas as pl
from jax.experimental.pallas import tpu as pltpu

DROPOUT_P = 0.2


def _round_up(x, m):
    return (x + m - 1) // m * m


def _vmem_budget_bytes():
    """Chip VMEM capacity with ~15% headroom; conservative fallback off-TPU."""
    try:
        cap = int(pltpu.get_tpu_info().vmem_capacity_bytes)
    except Exception:
        cap = 64 << 20          # v7x per-TensorCore VMEM (smallest of the fleet)
    return int(cap * 0.85)


def _footprint_bytes(tile_m, tile_h, c):
    """Approx. VMEM working set for one grid step (double-buffered pipeline)."""
    return (2 * tile_m * c * 2          # x tiles (bf16)
            + 2 * tile_m * c * 4        # out tiles (f32)
            + 2 * c * tile_h * 2        # W1 slabs (bf16)
            + 2 * tile_h * c * 2        # W2 slabs (bf16)
            + 2 * (tile_h + c) * 4      # bias slabs (f32)
            + 2 * tile_m * tile_h * 4)  # h intermediate (f32 + bf16 copy headroom)


def _hash_u32(z):
    """murmur3-style finalizer: decorrelates consecutive counters (uint32)."""
    z = z ^ (z >> jnp.uint32(16))
    z = z * jnp.uint32(0x7FEB352D)
    z = z ^ (z >> jnp.uint32(15))
    z = z * jnp.uint32(0x846CA68B)
    z = z ^ (z >> jnp.uint32(16))
    return z


def _ffwd_kernel(seed_ref, x_ref, w1_ref, b1_ref, w2_ref, b2_ref, o_ref,
                 *, p, train, tm, nj):
    """Grid point (i, j): row tile i, hidden-dim slab j.

    out[i] = dropout( sum_j relu(x[i] @ W1[:, j] + b1[j]) @ W2[j, :] + b2 )
    """
    # Keep program_id / scalar reads at the top level (NOT inside pl.when) so
    # both the TPU lowering and interpret mode handle them.
    i = pl.program_id(0)
    j = pl.program_id(1)
    seed = seed_ref[0].astype(jnp.uint32)
    row_base = (i * tm).astype(jnp.uint32)

    def finalize(acc):
        y = acc + b2_ref[...]                                          # (tm, C) f32
        if train:
            # Inverted dropout (keep prob 1-p, scale 1/(1-p)). Stateless counter
            # hash keyed on (seed, global row, col): portable and tile-size
            # independent; runs on VPU slack while the MXU is the binding unit.
            # TODO(synk): RNG stream differs from torch.nn.Dropout's; only the
            # Bernoulli(1-p) / inverted-scaling semantics are matched.
            tm_, c = y.shape
            rows = (jax.lax.broadcasted_iota(jnp.int32, (tm_, c), 0)
                    .astype(jnp.uint32) + row_base)
            cols = jax.lax.broadcasted_iota(jnp.int32, (tm_, c), 1).astype(jnp.uint32)
            z = (seed * jnp.uint32(0x9E3779B1)
                 + rows * jnp.uint32(0xC2B2AE3D)
                 + cols * jnp.uint32(0x27D4EB2F))
            bits = _hash_u32(z)
            threshold = jnp.uint32(min(int(p * (2 ** 32)), 2 ** 32 - 1))
            keep = bits >= threshold                                   # drop if bits < thr
            y = jnp.where(keep, y * jnp.float32(1.0 / (1.0 - p)), 0.0)
        o_ref[...] = y.astype(o_ref.dtype)

    # bf16 MXU inputs (x already bf16 from the wrapper), f32 accumulation.
    h = jnp.dot(x_ref[...], w1_ref[...], preferred_element_type=jnp.float32)
    h = jnp.maximum(h + b1_ref[...], 0.0)                              # bias + ReLU, f32
    part = jnp.dot(h.astype(jnp.bfloat16), w2_ref[...],
                   preferred_element_type=jnp.float32)                 # (tm, C) f32

    if nj == 1:
        # Weights-resident fast path: single hidden-dim slab, write once.
        finalize(part)
    else:
        # H-tiled path: accumulate directly into the resident f32 output tile.
        @pl.when(j == 0)
        def _():
            o_ref[...] = jnp.zeros_like(o_ref)

        o_ref[...] += part

        @pl.when(j == nj - 1)
        def _():
            finalize(o_ref[...])


def feed_forward(x, w1, b1, w2, b2, *, train=False, seed=0,
                 tile_m=256, tile_h=None):
    """x: (B, T, C). w1: (C, 4C), b1: (4C,), w2: (4C, C), b2: (C,)."""
    B, T, C = x.shape
    Cw, H = w1.shape
    assert Cw == C and w2.shape == (H, C) and b1.shape == (H,) and b2.shape == (C,)

    M = B * T
    budget = _vmem_budget_bytes()

    tile_m = max(8, min(tile_m, _round_up(M, 8)))      # clamp for tiny inputs

    if tile_h is None:
        if _footprint_bytes(tile_m, H, C) <= budget:
            # Preferred: weights resident in VMEM, DMA'd once for the whole grid.
            tile_h = H
        else:
            # H must be tiled -> weights are re-streamed per row tile; raise
            # tile_m to amortize the streaming (flops/byte ~ tile_m).
            tile_m = max(8, min(max(tile_m, 512), _round_up(M, 8)))
            tile_h = H
            cap = min(H, 2048)
            for th in range(cap - cap % 128, 127, -128):
                if H % th == 0 and _footprint_bytes(tile_m, th, C) <= budget:
                    tile_h = th
                    break
    assert H % tile_h == 0, "tile_h must divide H"
    assert tile_h == H or tile_h % 128 == 0

    Mp = _round_up(M, tile_m)

    # x in bf16 (halves HBM->VMEM DMA and the double-buffer footprint).
    x2d = x.reshape(M, C).astype(jnp.bfloat16)
    if Mp != M:
        x2d = jnp.pad(x2d, ((0, Mp - M), (0, 0)))

    # Weights in bf16; biases stay f32 (added to the f32 accumulators).
    w1b = w1.astype(jnp.bfloat16)
    w2b = w2.astype(jnp.bfloat16)
    b1_2d = b1.reshape(1, H).astype(jnp.float32)
    b2_2d = b2.reshape(1, C).astype(jnp.float32)
    seed_arr = jnp.array([seed], dtype=jnp.int32)

    nj = H // tile_h
    kernel = functools.partial(_ffwd_kernel, p=DROPOUT_P, train=train,
                               tm=tile_m, nj=nj)

    footprint = _footprint_bytes(tile_m, tile_h, C)
    vmem_limit = int(min(budget, max(32 << 20, int(1.3 * footprint))))

    out = pl.pallas_call(
        kernel,
        out_shape=jax.ShapeDtypeStruct((Mp, C), jnp.float32),
        grid_spec=pltpu.PrefetchScalarGridSpec(
            num_scalar_prefetch=1,
            grid=(Mp // tile_m, nj),
            in_specs=[
                pl.BlockSpec((tile_m, C), lambda i, j, seed: (i, 0)),   # x row tile
                pl.BlockSpec((C, tile_h), lambda i, j, seed: (0, j)),   # W1 slab
                pl.BlockSpec((1, tile_h), lambda i, j, seed: (0, j)),   # b1 slab
                pl.BlockSpec((tile_h, C), lambda i, j, seed: (j, 0)),   # W2 slab
                pl.BlockSpec((1, C),      lambda i, j, seed: (0, 0)),   # b2
            ],
            out_specs=pl.BlockSpec((tile_m, C), lambda i, j, seed: (i, 0)),
        ),
        compiler_params=pltpu.CompilerParams(
            dimension_semantics=("parallel", "arbitrary"),
            vmem_limit_bytes=vmem_limit),
    )(seed_arr, x2d, w1b, b1_2d, w2b, b2_2d)

    return out[:M].reshape(B, T, C).astype(x.dtype)


def init_params(key, n_embd):
    """Deterministic init mimicking nn.Linear's U(-1/sqrt(fan_in), 1/sqrt(fan_in))."""
    h = 4 * n_embd
    k1, k2, k3, k4 = jax.random.split(key, 4)
    lim1 = 1.0 / (n_embd ** 0.5)
    lim2 = 1.0 / (h ** 0.5)
    w1 = jax.random.uniform(k1, (n_embd, h), jnp.float32, -lim1, lim1)
    b1 = jax.random.uniform(k2, (h,), jnp.float32, -lim1, lim1)
    w2 = jax.random.uniform(k3, (h, n_embd), jnp.float32, -lim2, lim2)
    b2 = jax.random.uniform(k4, (n_embd,), jnp.float32, -lim2, lim2)
    return w1, b1, w2, b2


if __name__ == "__main__":
    # Small shapes consistent with the module: (batch, seq, n_embd); C=128 keeps
    # the output last dim lane-dense. H = 4*C = 512.
    B, T, n_embd = 2, 8, 128

    key = jax.random.PRNGKey(0)
    kx, kp = jax.random.split(key)
    x = jax.random.normal(kx, (B, T, n_embd), dtype=jnp.float32)
    w1, b1, w2, b2 = init_params(kp, n_embd)

    # Pure-JAX reference (same bf16-input / f32-accumulate matmul recipe).
    x2d = x.reshape(-1, n_embd).astype(jnp.bfloat16)
    h_ref = jnp.maximum(
        jnp.dot(x2d, w1.astype(jnp.bfloat16),
                preferred_element_type=jnp.float32) + b1, 0.0)
    ref = (jnp.dot(h_ref.astype(jnp.bfloat16), w2.astype(jnp.bfloat16),
                   preferred_element_type=jnp.float32) + b2).reshape(B, T, n_embd)

    # Eval-mode forward, weights-resident path (tile_h = H, single j step).
    y_eval = feed_forward(x, w1, b1, w2, b2, train=False)
    y_eval = jax.block_until_ready(y_eval)
    assert jnp.allclose(y_eval, ref, atol=2e-2, rtol=2e-2), "mismatch (resident)"

    # Eval-mode forward exercising the H-tiled accumulator path (2 j steps).
    y_eval2 = feed_forward(x, w1, b1, w2, b2, train=False, tile_h=256)
    y_eval2 = jax.block_until_ready(y_eval2)
    assert jnp.allclose(y_eval2, ref, atol=2e-2, rtol=2e-2), "mismatch (H-tiled)"

    # Training-mode forward (dropout active, in-kernel stateless hash PRNG).
    y_train = feed_forward(x, w1, b1, w2, b2, train=True, seed=123)
    y_train = jax.block_until_ready(y_train)
    assert y_train.shape == (B, T, n_embd)
    assert bool(jnp.all(jnp.isfinite(y_train)))
    drop_frac = float(jnp.mean((y_train == 0.0).astype(jnp.float32)))
    assert 0.05 < drop_frac < 0.45, f"unexpected dropout fraction {drop_frac}"

    print("KERNEL_OK")
</pallas_src>

<mosaic_0001>
module attributes {stable_mosaic.version = 11 : i64} {
  func.func @_ffwd_kernel(%arg0: i32, %arg1: i32, %arg2: memref<1xi32, #tpu.memory_space<smem>>, %arg3: memref<16x128xbf16, #tpu.memory_space<vmem>>, %arg4: memref<128x512xbf16, #tpu.memory_space<vmem>>, %arg5: memref<1x512xf32, #tpu.memory_space<vmem>>, %arg6: memref<512x128xbf16, #tpu.memory_space<vmem>>, %arg7: memref<1x128xf32, #tpu.memory_space<vmem>>, %arg8: memref<16x128xf32, #tpu.memory_space<vmem>>) attributes {dimension_semantics = [#tpu.dimension_semantics<parallel>, #tpu.dimension_semantics<arbitrary>], iteration_bounds = array<i64: 1, 1>, scalar_prefetch = 1 : i64, scratch_operands = 0 : i64, tpu.core_type = #tpu.core_type<tc>, window_params = [{transform_indices = @transform_0, window_bounds = array<i64: 16, 128>}, {transform_indices = @transform_1, window_bounds = array<i64: 128, 512>}, {transform_indices = @transform_2, window_bounds = array<i64: 1, 512>}, {transform_indices = @transform_3, window_bounds = array<i64: 512, 128>}, {pipeline_mode = #tpu.pipeline_mode<synchronous>, transform_indices = @transform_4, window_bounds = array<i64: 1, 128>}, {transform_indices = @transform_5, window_bounds = array<i64: 16, 128>}]} {
    %c0 = arith.constant 0 : index
    %c0_0 = arith.constant 0 : index
    %0 = vector.load %arg3[%c0, %c0_0] : memref<16x128xbf16, #tpu.memory_space<vmem>>, vector<16x128xbf16>
    %c0_1 = arith.constant 0 : index
    %c0_2 = arith.constant 0 : index
    %1 = vector.load %arg4[%c0_1, %c0_2] : memref<128x512xbf16, #tpu.memory_space<vmem>>, vector<128x512xbf16>
    %cst = arith.constant dense<0.000000e+00> : vector<16x512xf32>
    %2 = tpu.matmul %0, %1, %cst {dimension_numbers = #tpu.dot_dimension_numbers<[1], [0], [0], [1], [0, 0, 1, 1], [], []>} : vector<16x128xbf16>, vector<128x512xbf16>, vector<16x512xf32> -> vector<16x512xf32>
    %c0_3 = arith.constant 0 : index
    %c0_4 = arith.constant 0 : index
    %3 = vector.load %arg5[%c0_3, %c0_4] : memref<1x512xf32, #tpu.memory_space<vmem>>, vector<1x512xf32>
    %4 = vector.broadcast %3 : vector<1x512xf32> to vector<16x512xf32>
    %5 = arith.addf %2, %4 : vector<16x512xf32>
    %cst_5 = arith.constant 0.000000e+00 : f32
    %6 = vector.broadcast %cst_5 : f32 to vector<16x512xf32>
    %7 = arith.maximumf %5, %6 : vector<16x512xf32>
    %8 = arith.truncf %7 : vector<16x512xf32> to vector<16x512xbf16>
    %c0_6 = arith.constant 0 : index
    %c0_7 = arith.constant 0 : index
    %9 = vector.load %arg6[%c0_6, %c0_7] : memref<512x128xbf16, #tpu.memory_space<vmem>>, vector<512x128xbf16>
    %cst_8 = arith.constant dense<0.000000e+00> : vector<16x128xf32>
    %10 = tpu.matmul %8, %9, %cst_8 {dimension_numbers = #tpu.dot_dimension_numbers<[1], [0], [0], [1], [0, 0, 1, 1], [], []>} : vector<16x512xbf16>, vector<512x128xbf16>, vector<16x128xf32> -> vector<16x128xf32>
    %c0_9 = arith.constant 0 : index
    %c0_10 = arith.constant 0 : index
    %11 = vector.load %arg7[%c0_9, %c0_10] : memref<1x128xf32, #tpu.memory_space<vmem>>, vector<1x128xf32>
    %12 = vector.broadcast %11 : vector<1x128xf32> to vector<16x128xf32>
    %13 = arith.addf %10, %12 : vector<16x128xf32>
    %c0_11 = arith.constant 0 : index
    %c0_12 = arith.constant 0 : index
    %14 = vector.load %arg8[%c0_11, %c0_12] : memref<16x128xf32, #tpu.memory_space<vmem>>, vector<16x128xf32>
    tpu.vector_store %arg8[%c0_11, %c0_12], %13 {strides = array<i32>} : memref<16x128xf32, #tpu.memory_space<vmem>>, vector<16x128xf32>,
    return
  }
  func.func @transform_0(%arg0: i32, %arg1: i32, %arg2: memref<1xi32, #tpu.memory_space<smem>>) -> (i32, i32) {
    %c0_i32 = arith.constant 0 : i32
    %c0_i32_0 = arith.constant 0 : i32
    return %arg0, %c0_i32 : i32, i32
  }
  func.func @transform_1(%arg0: i32, %arg1: i32, %arg2: memref<1xi32, #tpu.memory_space<smem>>) -> (i32, i32) {
    %c0_i32 = arith.constant 0 : i32
    %c0_i32_0 = arith.constant 0 : i32
    return %c0_i32, %arg1 : i32, i32
  }
  func.func @transform_2(%arg0: i32, %arg1: i32, %arg2: memref<1xi32, #tpu.memory_space<smem>>) -> (i32, i32) {
    %c0_i32 = arith.constant 0 : i32
    %c0_i32_0 = arith.constant 0 : i32
    return %c0_i32, %arg1 : i32, i32
  }
  func.func @transform_3(%arg0: i32, %arg1: i32, %arg2: memref<1xi32, #tpu.memory_space<smem>>) -> (i32, i32) {
    %c0_i32 = arith.constant 0 : i32
    %c0_i32_0 = arith.constant 0 : i32
    return %arg1, %c0_i32 : i32, i32
  }
  func.func @transform_4(%arg0: i32, %arg1: i32, %arg2: memref<1xi32, #tpu.memory_space<smem>>) -> (i32, i32) {
    %c0_i32 = arith.constant 0 : i32
    %c0_i32_0 = arith.constant 0 : i32
    %c0_i32_1 = arith.constant 0 : i32
    return %c0_i32, %c0_i32_0 : i32, i32
  }
  func.func @transform_5(%arg0: i32, %arg1: i32, %arg2: memref<1xi32, #tpu.memory_space<smem>>) -> (i32, i32) {
    %c0_i32 = arith.constant 0 : i32
    %c0_i32_0 = arith.constant 0 : i32
    return %arg0, %c0_i32 : i32, i32
  }
}

</mosaic_0001>

<bundles_post_ra>
// kernel: tpu_custom_call.1
= control target key start
LH: loop header
LB: loop body
LE: loop exit
PB: predicated region body
PF: predicated region fallthrough
CT: control target
= control target key end

     0   :  { %12 = vsyncpa [#allocation5], 0  ;;  %s1146_s0 = inlined_call_operand.<no memory space> [shape: s32[1], index: 0, kind: input, shape index: {}]   ;;  %s1147_s1 = inlined_call_operand.hbm [shape: bf16[16,128], index: 1, kind: input, shape index: {}]   ;;  %s1148_s2 = inlined_call_operand.hbm [shape: bf16[128,512], index: 2, kind: input, shape index: {}]   ;;  %s1149_s3 = inlined_call_operand.vmem [shape: f32[1,512], index: 3, kind: input, shape index: {}]   ;;  %s1150_s4 = inlined_call_operand.hbm [shape: bf16[512,128], index: 4, kind: input, shape index: {}]   ;;  %s1151_s5 = inlined_call_operand.vmem [shape: f32[1,128], index: 5, kind: input, shape index: {}]   ;;  %s1152_s6 = inlined_call_operand.hbm [shape: f32[16,128], index: 6, kind: output, shape index: {}]  }
   0x1   :  { %13 = vsyncpa [#allocation8], 0 }
   0x2   :  { %14 = vsyncpa [#allocation6], 0  ;;  %s1046_s0 = smov [#allocation7]   ;;  %s952_s24 = scalar_lea.hbm %s1148_s2, 4096 }
   0x3   :  { %s32_s21 = sshll.u32 %s1046_s0, 4  ;;  %p953_p0 = scmp.ne.s32.totalorder %s1148_s2, %s952_s24  ;;  %s33_s21 = int_to_ptr.vmem [resolvable:$true] %s32_s21 }
   0x4   :  { %p956_p1 = scmp.lt.u32.totalorder %s952_s24, %s1148_s2 }
   0x6   :  { %p958_p2 = pnand %p956_p1, %p953_p0 }
   0x8   :  { %961 = shalt.err (!%p958_p2)
}
   0x9   :  { %s962_s29 = scalar_lea.vmem %s33_s21, 4096  ;;  %p967_p4 = scmp.lt.s32.totalorder %s33_s21, %s33_s21 }
   0xa   :  { %p963_p3 = scmp.ne.s32.totalorder %s33_s21, %s962_s29  ;;  %p968_p5 = scmp.lt.s32.totalorder %s962_s29, %s962_s29 }
   0xc   :  { %p969_p6 = por %p968_p5, %p967_p4 }
   0xe   :  { %p970_p7 = pnand %p969_p6, %p963_p3 }
  0x10   :  { %973 = shalt.err (!%p970_p7)
}
  0x11   :  { %s1047_s30 = smov 256   ;;  %s1048_s7 = smov 16  }
  0x12   :  { %38 = dma.hbm_to_vmem [thread:$0]  %s1148_s2, 4096, %s33_s21, [#allocation8], %s1047_s30, %s1047_s30, %s1048_s7  }
  0x13   :  { %s1049_s10 = smov [#allocation4]   ;;  %s974_s14 = scalar_lea.hbm %s1147_s1, 128 }
  0x14   :  { %s20_s11 = sshll.u32 %s1049_s10, 4  ;;  %p975_p8 = scmp.ne.s32.totalorder %s1147_s1, %s974_s14  ;;  %s21_s11 = int_to_ptr.vmem [resolvable:$true] %s20_s11 }
  0x15   :  { %p978_p9 = scmp.lt.u32.totalorder %s974_s14, %s1147_s1 }
  0x17   :  { %p980_p10 = pnand %p978_p9, %p975_p8 }
  0x19   :  { %983 = shalt.err (!%p980_p10)
}
  0x1a   :  { %s984_s19 = scalar_lea.vmem %s21_s11, 128  ;;  %p989_p12 = scmp.lt.s32.totalorder %s21_s11, %s21_s11 }
  0x1b   :  { %p985_p11 = scmp.ne.s32.totalorder %s21_s11, %s984_s19  ;;  %p990_p13 = scmp.lt.s32.totalorder %s984_s19, %s984_s19 }
  0x1d   :  { %p991_p0 = por %p990_p13, %p989_p12 }
  0x1f   :  { %p992_p1 = pnand %p991_p0, %p985_p11 }
  0x21   :  { %995 = shalt.err (!%p992_p1)
}
  0x22   :  { %s1050_s2 = smov 64   ;;  %s1051_s20 = smov 4  }
  0x23   :  { %26 = dma.hbm_to_vmem [thread:$0]  %s1147_s1, 128, %s21_s11, [#allocation5], %s1050_s2, %s1050_s2, %s1051_s20  }
  0x24   :  { %s1052_s22 = smov [#allocation9]   ;;  %s996_s26 = scalar_lea.hbm %s1150_s4, 4096 }
  0x25   :  { %s46_s23 = sshll.u32 %s1052_s22, 4  ;;  %p997_p2 = scmp.ne.s32.totalorder %s1150_s4, %s996_s26  ;;  %s47_s23 = int_to_ptr.vmem [resolvable:$true] %s46_s23 }
  0x26   :  { %p1000_p3 = scmp.lt.u32.totalorder %s996_s26, %s1150_s4 }
  0x28   :  { %p1002_p4 = pnand %p1000_p3, %p997_p2 }
  0x2a   :  { %1005 = shalt.err (!%p1002_p4)
}
  0x2b   :  { %s1006_s7 = scalar_lea.vmem %s47_s23, 4096  ;;  %p1011_p6 = scmp.lt.s32.totalorder %s47_s23, %s47_s23 }
  0x2c   :  { %p1007_p5 = scmp.ne.s32.totalorder %s47_s23, %s1006_s7  ;;  %p1012_p7 = scmp.lt.s32.totalorder %s1006_s7, %s1006_s7 }
  0x2e   :  { %p1013_p8 = por %p1012_p7, %p1011_p6 }
  0x30   :  { %p1014_p9 = pnand %p1013_p8, %p1007_p5 }
  0x32   :  { %1017 = shalt.err (!%p1014_p9)
}
  0x33   :  { %52 = dma.hbm_to_vmem [thread:$0]  %s1150_s4, 4096, %s47_s23, [#allocation8], %s1050_s2, %s1050_s2, %s1051_s20  }
  0x34   :  { %1040 = dma.done.wait [#allocation5], 128  }
  0x35   :  { %1041 = vsyncadd [#allocation5], 4294967168 }
  0x36   :  { %1042 = dma.done.wait [#allocation8], 8192  }
  0x37   :  { %1043 = vsyncadd [#allocation8], 4294959104  ;;  %v1053_v0 = vmov 0   ;;  %v871_v1 = vld [vmem:[#allocation7 + $0x4] ss:$16 sps:$4 sm:$0xff]   ;;  %v919_v34 = vld [vmem:[#allocation4] sm:$0xff]  }
  0x38   :  { %319 = vmatprep.mubr.bf16.mxu0 %v1053_v0  ;;  %362 = vmatprep.mubr.bf16.mxu1 %v1053_v0  ;;  %v873_v2 = vld [vmem:[#allocation7 + $0xc] ss:$16 sps:$4 sm:$0xff]   ;;  %v875_v3 = vld [vmem:[#allocation7] ss:$16 sps:$4 sm:$0xff]   ;;  %v876_v4 = vld [vmem:[#allocation7 + $0x8] ss:$16 sps:$4 sm:$0xff]  }
  0x39   :  { %287 = vmatprep.subr.bf16.mxu0 %v871_v1  ;;  %330 = vmatprep.subr.bf16.mxu1 %v873_v2  ;;  %v877_v5 = vld [vmem:[#allocation7 + $0x24] ss:$16 sps:$4 sm:$0xff]   ;;  %v879_v6 = vld [vmem:[#allocation7 + $0x2c] ss:$16 sps:$4 sm:$0xff]   ;;  %v881_v7 = vld [vmem:[#allocation7 + $0x20] ss:$16 sps:$4 sm:$0xff]   ;;  %v101_v2 = vlaneseq }
  0x3a   :  { %288 = vmatpush1.bf16.msra.mxu0 %v875_v3  ;;  %331 = vmatpush1.bf16.msra.mxu1 %v876_v4  ;;  %v882_v8 = vld [vmem:[#allocation7 + $0x28] ss:$16 sps:$4 sm:$0xff]   ;;  %v883_v9 = vld [vmem:[#allocation7 + $0x44] ss:$16 sps:$4 sm:$0xff]   ;;  %v885_v10 = vld [vmem:[#allocation7 + $0x4c] ss:$16 sps:$4 sm:$0xff]  }
  0x3b   :  { %289 = vmatprep.subr.bf16.mxu0 %v877_v5  ;;  %332 = vmatprep.subr.bf16.mxu1 %v879_v6  ;;  %v887_v11 = vld [vmem:[#allocation7 + $0x40] ss:$16 sps:$4 sm:$0xff]   ;;  %v888_v12 = vld [vmem:[#allocation7 + $0x48] ss:$16 sps:$4 sm:$0xff]   ;;  %v889_v13 = vld [vmem:[#allocation7 + $0x64] ss:$16 sps:$4 sm:$0xff]  }
  0x3c   :  { %v891_v14 = vld [vmem:[#allocation7 + $0x6c] ss:$16 sps:$4 sm:$0xff]   ;;  %v893_v15 = vld [vmem:[#allocation7 + $0x60] ss:$16 sps:$4 sm:$0xff]   ;;  %v894_v16 = vld [vmem:[#allocation7 + $0x68] ss:$16 sps:$4 sm:$0xff]  }
  0x3d   :  { %v895_v17 = vld [vmem:[#allocation7 + $0x84] ss:$16 sps:$4 sm:$0xff]   ;;  %v897_v18 = vld [vmem:[#allocation7 + $0x8c] ss:$16 sps:$4 sm:$0xff]   ;;  %v899_v19 = vld [vmem:[#allocation7 + $0x80] ss:$16 sps:$4 sm:$0xff]  }
  0x3e   :  { %290 = vmatpush1.bf16.msra.mxu0 %v881_v7  ;;  %333 = vmatpush1.bf16.msra.mxu1 %v882_v8  ;;  %v900_v20 = vld [vmem:[#allocation7 + $0x88] ss:$16 sps:$4 sm:$0xff]   ;;  %v901_v21 = vld [vmem:[#allocation7 + $0xa4] ss:$16 sps:$4 sm:$0xff]   ;;  %v903_v22 = vld [vmem:[#allocation7 + $0xac] ss:$16 sps:$4 sm:$0xff]  }
  0x3f   :  { %291 = vmatprep.subr.bf16.mxu0 %v883_v9  ;;  %334 = vmatprep.subr.bf16.mxu1 %v885_v10  ;;  %v905_v23 = vld [vmem:[#allocation7 + $0xa0] ss:$16 sps:$4 sm:$0xff]   ;;  %v906_v24 = vld [vmem:[#allocation7 + $0xa8] ss:$16 sps:$4 sm:$0xff]   ;;  %v907_v25 = vld [vmem:[#allocation7 + $0xc4] ss:$16 sps:$4 sm:$0xff]  }
  0x40   :  { %v909_v26 = vld [vmem:[#allocation7 + $0xcc] ss:$16 sps:$4 sm:$0xff]   ;;  %v911_v27 = vld [vmem:[#allocation7 + $0xc0] ss:$16 sps:$4 sm:$0xff]   ;;  %v912_v28 = vld [vmem:[#allocation7 + $0xc8] ss:$16 sps:$4 sm:$0xff]  }
  0x41   :  { %v913_v29 = vld [vmem:[#allocation7 + $0xe4] ss:$16 sps:$4 sm:$0xff]   ;;  %v915_v30 = vld [vmem:[#allocation7 + $0xec] ss:$16 sps:$4 sm:$0xff]   ;;  %v917_v31 = vld [vmem:[#allocation7 + $0xe0] ss:$16 sps:$4 sm:$0xff]  }
  0x42   :  { %292 = vmatpush1.bf16.msra.mxu0 %v887_v11  ;;  %335 = vmatpush1.bf16.msra.mxu1 %v888_v12  ;;  %v918_v32 = vld [vmem:[#allocation7 + $0xe8] ss:$16 sps:$4 sm:$0xff]   ;;  %v920_v33 = vld [vmem:[#allocation9 + $0x40] sm:$0xff]   ;;  %v928_v42 = vld [vmem:[#allocation9 + $0x50] sm:$0xff]   ;;  %v102_v3 = vshrl.u32 %v101_v2, 7  ;;  %s1054_s11 = smov [#allocation10]  }
  0x43   :  { %293 = vmatprep.subr.bf16.mxu0 %v889_v13  ;;  %336 = vmatprep.subr.bf16.mxu1 %v891_v14  ;;  %v921_v35 = vld [vmem:[#allocation9 + $0xc0] sm:$0xff]   ;;  %v924_v38 = vld [vmem:[#allocation9 + $0x48] sm:$0xff]   ;;  %v929_v43 = vld [vmem:[#allocation9 + $0xd0] sm:$0xff]   ;;  %s737_s12 = sshll.u32 %s1054_s11, 4  ;;  %s738_s12 = int_to_ptr.vmem [resolvable:$true] %s737_s12 }
  0x44   :  { %v922_v36 = vld [vmem:[#allocation9] sm:$0xff]   ;;  %v925_v39 = vld [vmem:[#allocation9 + $0xc8] sm:$0xff]   ;;  %v930_v44 = vld [vmem:[#allocation9 + $0x10] sm:$0xff]   ;;  %v103_v4 = vsub.s32 0, %v102_v3  ;;  %v111_v5 = vsub.s32 2, %v102_v3  ;;  %v107_v7 = vsub.s32 1, %v102_v3  ;;  %p1023_p11 = scmp.lt.s32.totalorder %s738_s12, %s738_s12 }
  0x45   :  { %v923_v37 = vld [vmem:[#allocation9 + $0x80] sm:$0xff]   ;;  %v926_v40 = vld [vmem:[#allocation9 + $0x8] sm:$0xff]   ;;  %v931_v45 = vld [vmem:[#allocation9 + $0x90] sm:$0xff]   ;;  %v115_v8 = vsub.s32 3, %v102_v3 }
  0x46   :  { %294 = vmatpush1.bf16.msra.mxu0 %v893_v15  ;;  %337 = vmatpush1.bf16.msra.mxu1 %v894_v16  ;;  %v927_v41 = vld [vmem:[#allocation9 + $0x88] sm:$0xff]   ;;  %v932_v46 = vld [vmem:[#allocation9 + $0x58] sm:$0xff]   ;;  %v936_v50 = vld [vmem:[#allocation9 + $0x60] sm:$0xff]  }
  0x47   :  { %295 = vmatprep.subr.bf16.mxu0 %v895_v17  ;;  %338 = vmatprep.subr.bf16.mxu1 %v897_v18  ;;  %v933_v47 = vld [vmem:[#allocation9 + $0xd8] sm:$0xff]   ;;  %v937_v51 = vld [vmem:[#allocation9 + $0xe0] sm:$0xff]   ;;  %v940_v54 = vld [vmem:[#allocation9 + $0x68] sm:$0xff]  }
  0x48   :  { %v934_v48 = vld [vmem:[#allocation9 + $0x18] sm:$0xff]   ;;  %v938_v52 = vld [vmem:[#allocation9 + $0x20] sm:$0xff]   ;;  %v941_v55 = vld [vmem:[#allocation9 + $0xe8] sm:$0xff]  }
  0x49   :  { %v935_v49 = vld [vmem:[#allocation9 + $0x98] sm:$0xff]   ;;  %v939_v53 = vld [vmem:[#allocation9 + $0xa0] sm:$0xff]   ;;  %v942_v56 = vld [vmem:[#allocation9 + $0x28] sm:$0xff]  }
  0x4a   :  { %296 = vmatpush1.bf16.msra.mxu0 %v899_v19  ;;  %339 = vmatpush1.bf16.msra.mxu1 %v900_v20  ;;  %v943_v57 = vld [vmem:[#allocation9 + $0xa8] sm:$0xff]   ;;  %v944_v58 = vld [vmem:[#allocation9 + $0x70] sm:$0xff]   ;;  %v948_v62 = vld [vmem:[#allocation9 + $0x78] sm:$0xff]  }
  0x4b   :  { %297 = vmatprep.subr.bf16.mxu0 %v901_v21  ;;  %340 = vmatprep.subr.bf16.mxu1 %v903_v22  ;;  %v945_v59 = vld [vmem:[#allocation9 + $0xf0] sm:$0xff]   ;;  %v949_v63 = vld [vmem:[#allocation9 + $0xf8] sm:$0xff]  }
  0x4c   :  { %v946_v60 = vld [vmem:[#allocation9 + $0x30] sm:$0xff]   ;;  %v950_v0 = vld [vmem:[#allocation9 + $0x38] sm:$0xff]  }
  0x4d   :  { %v947_v61 = vld [vmem:[#allocation9 + $0xb0] sm:$0xff]   ;;  %v951_v1 = vld [vmem:[#allocation9 + $0xb8] sm:$0xff]  }
  0x4e   :  { %298 = vmatpush1.bf16.msra.mxu0 %v905_v23  ;;  %341 = vmatpush1.bf16.msra.mxu1 %v906_v24  ;;  %v99_v6 = vld [vmem:[%s1149_s3] sm:$0xf] }
  0x4f   :  { %299 = vmatprep.subr.bf16.mxu0 %v907_v25  ;;  %342 = vmatprep.subr.bf16.mxu1 %v909_v26  ;;  %v104_v9 = vrot.slane %v99_v6, %v103_v4  ;;  %v112_v10 = vrot.slane %v99_v6, %v111_v5  ;;  %v108_v11 = vrot.slane %v99_v6, %v107_v7 }
  0x50   :  { %v116_v12 = vrot.slane %v99_v6, %v115_v8 }
  0x52   :  { %300 = vmatpush1.bf16.msra.mxu0 %v911_v27  ;;  %343 = vmatpush1.bf16.msra.mxu1 %v912_v28 }
  0x53   :  { %301 = vmatprep.subr.bf16.mxu0 %v913_v29  ;;  %344 = vmatprep.subr.bf16.mxu1 %v915_v30 }
  0x56   :  { %302 = vmatpush1.bf16.msra.mxu0 %v917_v31  ;;  %345 = vmatpush1.bf16.msra.mxu1 %v918_v32 }
  0x57   :  { %816 = vmatprep.subr.bf16.mxu0 %v920_v33  ;;  %838 = vmatprep.subr.bf16.mxu1 %v921_v35 }
  0x59   :  { %320 = vmatmul.mubr.bf16.vlgmr.msra.gmra.mrb[0].mxu0 %v919_v34  ;;  %363 = vmatmul.mubr.bf16.vlgmr.msra.gmra.mrb[0].mxu1 %v919_v34 }
  0x5a   :  { %817 = vmatpush3.bf16.msra.mxu0 %v922_v36  ;;  %839 = vmatpush3.bf16.msra.mxu1 %v923_v37 }
  0x5b   :  { %818 = vmatprep.subr.bf16.mxu0 %v924_v38  ;;  %840 = vmatprep.subr.bf16.mxu1 %v925_v39 }
  0x5e   :  { %819 = vmatpush3.bf16.msra.mxu0 %v926_v40  ;;  %841 = vmatpush3.bf16.msra.mxu1 %v927_v41 }
  0x5f   :  { %820 = vmatprep.subr.bf16.mxu0 %v928_v42  ;;  %842 = vmatprep.subr.bf16.mxu1 %v929_v43  ;;  %v783_v43 = vld [vmem:[%s1151_s5] ss:$0 sm:$0xff]  ;;  %s1018_s5 = scalar_lea.vmem %s738_s12, 256 }
  0x60   :  { %p1019_p10 = scmp.ne.s32.totalorder %s738_s12, %s1018_s5  ;;  %p1024_p12 = scmp.lt.s32.totalorder %s1018_s5, %s1018_s5 }
  0x62   :  { %821 = vmatpush3.bf16.msra.mxu0 %v930_v44  ;;  %843 = vmatpush3.bf16.msra.mxu1 %v931_v45  ;;  %p1025_p13 = por %p1024_p12, %p1023_p11 }
  0x63   :  { %822 = vmatprep.subr.bf16.mxu0 %v932_v46  ;;  %844 = vmatprep.subr.bf16.mxu1 %v933_v47 }
  0x64   :  { %p1026_p0 = pnand %p1025_p13, %p1019_p10 }
  0x66   :  { %823 = vmatpush3.bf16.msra.mxu0 %v934_v48  ;;  %845 = vmatpush3.bf16.msra.mxu1 %v935_v49 }
  0x67   :  { %824 = vmatprep.subr.bf16.mxu0 %v936_v50  ;;  %846 = vmatprep.subr.bf16.mxu1 %v937_v51 }
  0x6a   :  { %825 = vmatpush3.bf16.msra.mxu0 %v938_v52  ;;  %847 = vmatpush3.bf16.msra.mxu1 %v939_v53 }
  0x6b   :  { %826 = vmatprep.subr.bf16.mxu0 %v940_v54  ;;  %848 = vmatprep.subr.bf16.mxu1 %v941_v55 }
  0x6e   :  { %827 = vmatpush3.bf16.msra.mxu0 %v942_v56  ;;  %849 = vmatpush3.bf16.msra.mxu1 %v943_v57 }
  0x6f   :  { %828 = vmatprep.subr.bf16.mxu0 %v944_v58  ;;  %850 = vmatprep.subr.bf16.mxu1 %v945_v59 }
  0x72   :  { %829 = vmatpush3.bf16.msra.mxu0 %v946_v60  ;;  %851 = vmatpush3.bf16.msra.mxu1 %v947_v61 }
  0x73   :  { %830 = vmatprep.subr.bf16.mxu0 %v948_v62  ;;  %852 = vmatprep.subr.bf16.mxu1 %v949_v63 }
  0x76   :  { %831 = vmatpush3.bf16.msra.mxu0 %v950_v0  ;;  %853 = vmatpush3.bf16.msra.mxu1 %v951_v1 }
 0x12c   :  { %v321_v13 = vpop.f32.mrb[0].mxu0  ;;  %v364_v14 = vpop.f32.mrb[0].mxu1 }
 0x12d   :  { %v322_v15 = vadd.f32 %v321_v13, %v104_v9  ;;  %v365_v16 = vadd.f32 %v364_v14, %v112_v10  ;;  %v323_v17 = vpop.f32.mrb[1].mxu0  ;;  %v366_v18 = vpop.f32.mrb[1].mxu1 }
 0x12e   :  { %v324_v19 = vadd.f32 %v323_v17, %v108_v11  ;;  %v367_v20 = vadd.f32 %v366_v18, %v116_v12  ;;  %v325_v21 = vpop.f32.mrb[2].mxu0  ;;  %v368_v22 = vpop.f32.mrb[2].mxu1 }
 0x12f   :  { %v375_v23 = vmax.f32 %v365_v16, 0.0  ;;  %v326_v24 = vadd.f32 %v325_v21, %v104_v9  ;;  %v369_v25 = vadd.f32 %v368_v22, %v112_v10  ;;  %v327_v26 = vpop.f32.mrb[3].mxu0  ;;  %v370_v27 = vpop.f32.mrb[3].mxu1  ;;  %v373_v31 = vmax.f32 %v322_v15, 0.0 }
 0x130   :  { %v376_v28 = vmax.f32 %v367_v20, 0.0  ;;  %v328_v29 = vadd.f32 %v327_v26, %v108_v11  ;;  %v371_v30 = vadd.f32 %v370_v27, %v116_v12  ;;  %v374_v34 = vmax.f32 %v324_v19, 0.0 }
 0x131   :  { %v377_v32 = vmax.f32 %v326_v24, 0.0  ;;  %v379_v33 = vmax.f32 %v369_v25, 0.0 }
 0x132   :  { %v378_v35 = vmax.f32 %v328_v29, 0.0  ;;  %v380_v36 = vmax.f32 %v371_v30, 0.0 }
 0x133   :  { %v381_v37 = vpack.c.bf16 %v377_v32, %v373_v31  ;;  %v383_v38 = vpack.c.bf16 %v379_v33, %v375_v23 }
 0x134   :  { %v382_v39 = vpack.c.bf16 %v378_v35, %v374_v34  ;;  %v384_v40 = vpack.c.bf16 %v380_v36, %v376_v28 }
 0x136   :  { %680 = vmatprep.mubr.bf16.mxu0 %v382_v39  ;;  %721 = vmatprep.mubr.bf16.mxu1 %v384_v40 }
 0x137   :  { %681 = vmatmul.mubr.bf16.vlgmr.msra.gmra.mrb[4].mxu0 %v381_v37  ;;  %722 = vmatmul.mubr.bf16.vlgmr.msra.gmra.mrb[4].mxu1 %v383_v38 }
 0x20a   :  { %v832_v41 = vpop.f32.mrb[4].mxu0  ;;  %v854_v42 = vpop.f32.mrb[4].mxu1 }
 0x20b   :  { %v833_v44 = vpop.f32.mrb[5].mxu0  ;;  %v855_v45 = vpop.f32.mrb[5].mxu1 }
 0x20c   :  { %v834_v46 = vadd.f32 %v833_v44, %v832_v41  ;;  %v856_v47 = vadd.f32 %v855_v45, %v854_v42  ;;  %v835_v48 = vpop.f32.mrb[6].mxu0  ;;  %v857_v49 = vpop.f32.mrb[6].mxu1 }
 0x20d   :  { %v836_v50 = vpop.f32.mrb[7].mxu0  ;;  %v858_v51 = vpop.f32.mrb[7].mxu1 }
 0x20e   :  { %v683_v52 = vadd.f32 %v834_v46, %v783_v43  ;;  %v837_v53 = vadd.f32 %v836_v50, %v835_v48  ;;  %v859_v54 = vadd.f32 %v858_v51, %v857_v49 }
 0x210   :  { %v724_v55 = vadd.f32 %v856_v47, %v683_v52  ;;  %v686_v56 = vadd.f32 %v837_v53, %v783_v43 }
 0x212   :  { %730 = vst [vmem:[#allocation10] sm:$0xff] %v724_v55  ;;  %v727_v57 = vadd.f32 %v859_v54, %v686_v56 }
 0x214   :  { %731 = vst [vmem:[#allocation10 + $0x8] sm:$0xff] %v727_v57 }
 0x215   :  { %1029 = shalt.err (!%p1026_p0)
}
 0x216   :  { %s1030_s15 = scalar_lea.hbm %s1152_s6, 256 }
 0x217   :  { %p1031_p1 = scmp.ne.s32.totalorder %s1152_s6, %s1030_s15  ;;  %p1034_p2 = scmp.lt.u32.totalorder %s1030_s15, %s1152_s6 }
 0x219   :  { %p1036_p3 = pnand %p1034_p2, %p1031_p1 }
 0x21b   :  { %1039 = shalt.err (!%p1036_p3)
}
 0x21c   :  { %s1055_s2 = smov 128   ;;  %s1056_s20 = smov 8  }
 0x21d   :  { %743 = dma.vmem_to_hbm [thread:$0]  %s738_s12, 256, %s1152_s6, [#allocation6], %s1055_s2, %s1055_s2, %s1056_s20  }
 0x21e   :  { %1044 = dma.done.wait [#allocation6], 256  }
 0x21f   :  { %1045 = vsyncadd [#allocation6], 4294967040 }
 0x220   :  { %747 = vsyncpa [#allocation5], 1 }
 0x221   :  { %748 = vsyncpa [#allocation8], 1 }
 0x222   :  { %749 = vsyncpa [#allocation6], 1 }

</bundles_post_ra>
